<compile_context>
chip_gen: v5e
topology: v5e:2x2
jax: 0.10.0
libtpu: 0.0.40
codegen_flags: <defaults>
</compile_context>

<pallas_src>
import jax
import jax.numpy as jnp
from jax.experimental import pallas as pl
from jax.experimental.pallas import tpu as pltpu

SUBLANE = 8
MAX_TM = 1024  # multiple of 8; safe for v5e's 16 MiB scoped VMEM per review


def _round_up(n, m):
    return ((n + m - 1) // m) * m


def linear_kernel(x_ref, w_ref, b_ref, o_ref):
    # bf16 x bf16 -> f32 MXU accumulate, f32 bias add (VPU), f32 store.
    acc = jnp.dot(x_ref[...], w_ref[...], preferred_element_type=jnp.float32)
    o_ref[...] = (acc + b_ref[...]).astype(o_ref.dtype)


def sentiment_model_forward(x, w_t, b):
    """y = x @ W.T + b  (nn.Linear forward).

    x:   (B, D_in)        bf16 (or f32) activations
    w_t: (D_in, D_out)    bf16 (or f32) -- W pre-transposed for a plain MXU matmul
    b:   (1, D_out)       f32 bias (epilogue stays f32)
    Returns (B, D_out)    f32
    """
    B, D_in = x.shape
    D_out = w_t.shape[1]
    assert w_t.shape[0] == D_in
    assert b.shape == (1, D_out)

    # Batch tile: multiple of 8 (sublane), capped at 1024.  Partial last tile
    # is handled by Pallas masking (no host-side padding of x).
    tm = min(MAX_TM, _round_up(B, SUBLANE))
    grid = (pl.cdiv(B, tm),)

    bytes_accessed = (x.size * x.dtype.itemsize
                      + w_t.size * w_t.dtype.itemsize
                      + b.size * b.dtype.itemsize
                      + B * D_out * 4)

    out = pl.pallas_call(
        linear_kernel,
        out_shape=jax.ShapeDtypeStruct((B, D_out), jnp.float32),
        grid=grid,
        in_specs=[
            # Streamed batch tiles of x (double-buffered by the pipeline).
            pl.BlockSpec((tm, D_in), lambda i: (i, 0)),
            # Weight and bias: constant block index -> stay VMEM-resident.
            pl.BlockSpec((D_in, D_out), lambda i: (0, 0)),
            pl.BlockSpec((1, D_out), lambda i: (0, 0)),
        ],
        # True-shaped output: last block dim equals the full array dim, so no
        # padded slab write and no wrapper-side slice afterwards.
        out_specs=pl.BlockSpec((tm, D_out), lambda i: (i, 0)),
        compiler_params=pltpu.CompilerParams(
            dimension_semantics=("parallel",)),
        cost_estimate=pl.CostEstimate(
            flops=2 * B * D_in * D_out,
            transcendentals=0,
            bytes_accessed=bytes_accessed),
    )(x, w_t, b)
    return out


def init_params(key, input_dim, output_dim):
    """nn.Linear-style init; returns bf16 kernel params + f32 reference copies."""
    kw, kb = jax.random.split(key)
    bound = 1.0 / jnp.sqrt(jnp.float32(input_dim))
    # PyTorch stores W as (output_dim, input_dim); we keep the transposed
    # (input_dim, output_dim) layout so the kernel is a plain x @ W_t matmul.
    w_t = jax.random.uniform(kw, (input_dim, output_dim), jnp.float32,
                             minval=-bound, maxval=bound)
    b = jax.random.uniform(kb, (output_dim,), jnp.float32,
                           minval=-bound, maxval=bound)

    w_t_bf16 = w_t.astype(jnp.bfloat16)
    b_f32 = b.reshape(1, output_dim)
    return w_t_bf16, b_f32


if __name__ == "__main__":
    key = jax.random.PRNGKey(0)
    k_x, k_p = jax.random.split(key)

    batch, input_dim, output_dim = 8, 32, 4
    # bf16 activations at the call boundary (halves the dominant HBM read).
    x = jax.random.normal(k_x, (batch, input_dim), jnp.float32).astype(jnp.bfloat16)
    w_t_bf16, b_f32 = init_params(k_p, input_dim, output_dim)

    y = sentiment_model_forward(x, w_t_bf16, b_f32)
    y = jax.block_until_ready(y)

    # Reference: same bf16 inputs, f32 math (matches the MXU f32 accumulate).
    y_ref = jnp.dot(x.astype(jnp.float32), w_t_bf16.astype(jnp.float32),
                    precision=jax.lax.Precision.HIGHEST) + b_f32

    assert y.shape == (batch, output_dim)
    assert y.dtype == jnp.float32
    assert jnp.allclose(y, y_ref, atol=1e-4, rtol=1e-4)

    print("KERNEL_OK")
</pallas_src>

<mosaic_0001>
module attributes {stable_mosaic.version = 11 : i64} {
  func.func @linear_kernel(%arg0: i32, %arg1: memref<8x32xbf16, #tpu.memory_space<vmem>>, %arg2: memref<32x4xbf16, #tpu.memory_space<vmem>>, %arg3: memref<1x4xf32, #tpu.memory_space<vmem>>, %arg4: memref<8x4xf32, #tpu.memory_space<vmem>>) attributes {dimension_semantics = [#tpu.dimension_semantics<parallel>], iteration_bounds = array<i64: 1>, scalar_prefetch = 0 : i64, scratch_operands = 0 : i64, tpu.core_type = #tpu.core_type<tc>, window_params = [{transform_indices = @transform_0, window_bounds = array<i64: 8, 32>}, {pipeline_mode = #tpu.pipeline_mode<synchronous>, transform_indices = @transform_1, window_bounds = array<i64: 32, 4>}, {pipeline_mode = #tpu.pipeline_mode<synchronous>, transform_indices = @transform_2, window_bounds = array<i64: 1, 4>}, {transform_indices = @transform_3, window_bounds = array<i64: 8, 4>}]} {
    %c0 = arith.constant 0 : index
    %c0_0 = arith.constant 0 : index
    %0 = vector.load %arg1[%c0, %c0_0] : memref<8x32xbf16, #tpu.memory_space<vmem>>, vector<8x32xbf16>
    %c0_1 = arith.constant 0 : index
    %c0_2 = arith.constant 0 : index
    %1 = vector.load %arg2[%c0_1, %c0_2] : memref<32x4xbf16, #tpu.memory_space<vmem>>, vector<32x4xbf16>
    %cst = arith.constant dense<0.000000e+00> : vector<8x4xf32>
    %2 = tpu.matmul %0, %1, %cst {dimension_numbers = #tpu.dot_dimension_numbers<[1], [0], [0], [1], [0, 0, 1, 1], [], []>} : vector<8x32xbf16>, vector<32x4xbf16>, vector<8x4xf32> -> vector<8x4xf32>
    %c0_3 = arith.constant 0 : index
    %c0_4 = arith.constant 0 : index
    %3 = vector.load %arg3[%c0_3, %c0_4] : memref<1x4xf32, #tpu.memory_space<vmem>>, vector<1x4xf32>
    %4 = vector.broadcast %3 : vector<1x4xf32> to vector<8x4xf32>
    %5 = arith.addf %2, %4 : vector<8x4xf32>
    %c0_5 = arith.constant 0 : index
    %c0_6 = arith.constant 0 : index
    %6 = vector.load %arg4[%c0_5, %c0_6] : memref<8x4xf32, #tpu.memory_space<vmem>>, vector<8x4xf32>
    tpu.vector_store %arg4[%c0_5, %c0_6], %5 {strides = array<i32>} : memref<8x4xf32, #tpu.memory_space<vmem>>, vector<8x4xf32>,
    return
  }
  func.func @transform_0(%arg0: i32) -> (i32, i32) {
    %c0_i32 = arith.constant 0 : i32
    %c0_i32_0 = arith.constant 0 : i32
    return %arg0, %c0_i32 : i32, i32
  }
  func.func @transform_1(%arg0: i32) -> (i32, i32) {
    %c0_i32 = arith.constant 0 : i32
    %c0_i32_0 = arith.constant 0 : i32
    %c0_i32_1 = arith.constant 0 : i32
    return %c0_i32, %c0_i32_0 : i32, i32
  }
  func.func @transform_2(%arg0: i32) -> (i32, i32) {
    %c0_i32 = arith.constant 0 : i32
    %c0_i32_0 = arith.constant 0 : i32
    %c0_i32_1 = arith.constant 0 : i32
    return %c0_i32, %c0_i32_0 : i32, i32
  }
  func.func @transform_3(%arg0: i32) -> (i32, i32) {
    %c0_i32 = arith.constant 0 : i32
    %c0_i32_0 = arith.constant 0 : i32
    return %arg0, %c0_i32 : i32, i32
  }
}

</mosaic_0001>

<bundles_post_ra>
// kernel: tpu_custom_call.1
= control target key start
LH: loop header
LB: loop body
LE: loop exit
PB: predicated region body
PF: predicated region fallthrough
CT: control target
= control target key end

     0   :  { %vm36_vm0 = vcmask 261120   ;;  %vm53_vm1 = vcmask 31744   ;;  %s106_s1 = inlined_call_operand.vmem [shape: bf16[32,4], index: 1, kind: input, shape index: {}]   ;;  %s107_s2 = inlined_call_operand.vmem [shape: f32[1,4], index: 2, kind: input, shape index: {}]   ;;  %s108_s0 = inlined_call_operand.vmem [shape: bf16[8,32], index: 0, kind: input, shape index: {}]   ;;  %s109_s3 = inlined_call_operand.vmem [shape: f32[8,4], index: 3, kind: output, shape index: {}]  }
   0x1   :  { %v69_v0 = vld [vmem:[%s106_s1 + $0x8] sm:$0xff]  ;;  %v68_v1 = vld [vmem:[%s106_s1] sm:$0xff] }
   0x2   :  { %46 = vmatpush.bf16.msra.mxu0 %v69_v0  ;;  %v15_v2 = vld [vmem:[%s108_s0] sm:$0xf] }
   0x3   :  { %v70_v3 = vld [vmem:[%s107_s2] ss:$0 sm:$0xff] }
   0x6   :  { %47 = vmatpush.bf16.msra.mxu0 %v68_v1 }
   0x9   :  { %67 = vmatmul.msk.bf16.vlgmr.msra.gmra.mxu0 %vm36_vm0, %v15_v2 }
  0x86   :  { %v49_v4 = vpop.f32.mrf.mxu0 }
  0x87   :  { %v50_v5 = vadd.f32 %v70_v3, %v49_v4 }
  0x89   :  { %54 = vst.msk [vmem:[%s109_s3] sm:$0xff] %vm53_vm1, %v50_v5 }
  0x8e   :  { %v51_v6 = vpop.f32.mrf.mxu0 }

</bundles_post_ra>
